<compile_context>
chip_gen: v5e
topology: v5e:2x2
jax: 0.10.0
libtpu: 0.0.40
codegen_flags: <defaults>
</compile_context>

<pallas_src>
import functools

import jax
import jax.numpy as jnp
from jax import lax
from jax.experimental import pallas as pl
from jax.experimental.pallas import tpu as pltpu


def _make_kernel(k: int, dilated: int, H: int, W: int, C: int, images_per_block: int):
    HW = H * W
    L = images_per_block * HW
    pad1 = (k - 1) // 2

    def _mod(v, m):
        return jnp.bitwise_and(v, m - 1) if (m & (m - 1)) == 0 else v % m

    def kernel(x_ref, w_ref, p_ref, o_ref):
        # Images are concatenated along the lane axis; compute per-image positions
        # once so roll-based shifts never leak across image boundaries.
        pos = lax.broadcasted_iota(jnp.int32, (C, L), 1)
        ppos = _mod(pos, HW)       # flattened position inside its own image
        col = _mod(pos, W)         # column inside its own image

        def shift_mask(u, step, axis):
            # result[c, p] = u[c, p + step] if p+step stays inside the same image
            # (axis 0: row range, axis 1: column range), else 0.
            if step == 0:
                return u
            rolled = pltpu.roll(u, (-step) % L, axis=1)   # XLU lane rotation
            q, limit = (ppos, HW) if axis == 0 else (col, W)
            # `step` is a compile-time Python int -> one-sided compare only.
            valid = (q < limit - step) if step > 0 else (q >= -step)
            return jnp.where(valid, rolled, 0.0)

        w_all = w_ref[...].astype(jnp.float32)            # (4, k*C, C) — one load
        p = p_ref[...].astype(jnp.float32)                # (C, 4)
        b1a, t1, b2a, t2 = p[:, 0:1], p[:, 1:2], p[:, 2:3], p[:, 3:4]

        def conv(v, j, axis, dil, bias=None):
            # One MXU matmul producing all k tap outputs stacked on sublanes,
            # then shifted + masked accumulation of the k (C, L) slabs.
            big = jnp.dot(w_all[j], v, preferred_element_type=jnp.float32)  # (k*C, L)
            pad = pad1 * dil
            out = None
            for i in range(k):
                d = i * dil - pad
                step = d * W if axis == 0 else d
                slab = shift_mask(big[i * C:(i + 1) * C, :], step, axis)
                out = slab if out is None else out + slab
            if bias is not None:
                out = out + bias
            return out

        y = x_ref[...].astype(jnp.float32)
        y = conv(y, 0, axis=0, dil=1, bias=b1a)        # conv1a (k,1)
        y = jnp.maximum(y, 0.0)                        # nonLinear1a (ReLU)
        y = conv(y, 1, axis=1, dil=1)                  # conv1b (1,k); s1 folded into W
        y = y + t1                                     # bn1 shift (scale+bias folded)
        y = jnp.maximum(y, 0.0)                        # nonLinear1b (ReLU)
        y = conv(y, 2, axis=0, dil=dilated, bias=b2a)  # conv2a (k,1) dilated
        y = jnp.maximum(y, 0.0)                        # nonLinear2 (ReLU)
        y = conv(y, 3, axis=1, dil=dilated)            # conv2b (1,k) dilated; s2 folded
        y = y + t2                                     # bn2 shift
        # TODO(synk): training-mode Dropout / batch-stat BN / PReLU path not
        # implemented (eval semantics: dropout == identity, BN uses running stats).
        o_ref[...] = y.astype(o_ref.dtype)

    return kernel


def _pick_images_per_block(n, hw):
    """Fuse batch onto lanes on single-TC chips; keep >=2 blocks on v7x (2 TCs)."""
    try:
        kind = jax.devices()[0].device_kind.lower()
    except Exception:
        kind = ""
    cap = max(1, 2048 // hw)          # keep the lane axis modest / VMEM tiny
    if "v7" in kind:
        b = max(1, min(cap, n // 2))  # leave >=2 grid blocks for the two TCs
    else:
        b = min(cap, n)               # single TC: fewer grid steps is strictly better
    while n % b:
        b -= 1
    return b


def non_bt1d_main(x_nchw, params, k: int, dilated: int, images_per_block=None):
    N, Cin, H, W = x_nchw.shape
    Cout = params["w1a"].shape[-1]
    assert Cin == Cout, "module only type-checks when inChannel == outChannel"
    C = Cout
    HW = H * W
    if images_per_block is None:
        images_per_block = _pick_images_per_block(N, HW)
    B = images_per_block
    L = B * HW
    grid = N // B

    # (N,C,H,W) -> (C, N*HW): images side-by-side on the lane axis so every grid
    # block is a lane-dense (C, B*HW) slab (unmasked vst, few grid steps).
    x = jnp.transpose(x_nchw.reshape(N, C, HW), (1, 0, 2)).reshape(C, N * HW)

    s1 = params["s1"][0]
    s2 = params["s2"][0]

    def stack_w(w_kio):  # (k, Ci, Co) -> (k*Co, Ci), tap-major rows
        kk, ci, co = w_kio.shape
        return jnp.transpose(w_kio, (0, 2, 1)).reshape(kk * co, ci)

    # BN scales folded into the output-channel rows of conv1b / conv2b weights;
    # all four conv weights packed into ONE array -> one DMA per grid step.
    w_packed = jnp.stack(
        [
            stack_w(params["w1a"]),
            stack_w(params["w1b"] * s1[None, None, :]),
            stack_w(params["w2a"]),
            stack_w(params["w2b"] * s2[None, None, :]),
        ],
        axis=0,
    )  # (4, k*C, C)

    # Remaining per-channel params packed: [b1a, t1 + s1*b1b, b2a, t2 + s2*b2b].
    p_packed = jnp.stack(
        [
            params["b1a"][0],
            params["t1"][0] + s1 * params["b1b"][0],
            params["b2a"][0],
            params["t2"][0] + s2 * params["b2b"][0],
        ],
        axis=1,
    )  # (C, 4)

    kernel = _make_kernel(k, dilated, H, W, C, B)

    out = pl.pallas_call(
        kernel,
        out_shape=jax.ShapeDtypeStruct((C, N * HW), x.dtype),
        grid_spec=pltpu.PrefetchScalarGridSpec(
            num_scalar_prefetch=0,
            grid=(grid,),
            in_specs=[
                pl.BlockSpec((C, L), lambda n: (0, n)),
                pl.BlockSpec(w_packed.shape, lambda n: (0, 0, 0)),
                pl.BlockSpec(p_packed.shape, lambda n: (0, 0)),
            ],
            out_specs=pl.BlockSpec((C, L), lambda n: (0, n)),
        ),
        compiler_params=pltpu.CompilerParams(
            dimension_semantics=("parallel",),  # image blocks are independent
            # Toy workload; TODO(synk): per-generation vmem limit once row-tiled
            # real-resolution blocks are implemented.
            vmem_limit_bytes=32 * 1024 * 1024,
        ),
    )(x, w_packed, p_packed)

    return jnp.transpose(out.reshape(C, N, H, W), (1, 0, 2, 3))  # back to NCHW


def _ref_forward(x_nchw, p, k, dilated):
    """Pure-JAX NCHW reference (mirrors the PyTorch forward in eval mode)."""
    def conv(y, w_kio, bias, axis, dil):
        if axis == 0:  # (k, 1) kernel over H
            w_oihw = jnp.transpose(w_kio, (2, 1, 0))[:, :, :, None]
            padding = [(((k - 1) // 2) * dil,) * 2, (0, 0)]
            rhs_dil = (dil, 1)
        else:          # (1, k) kernel over W
            w_oihw = jnp.transpose(w_kio, (2, 1, 0))[:, :, None, :]
            padding = [(0, 0), (((k - 1) // 2) * dil,) * 2]
            rhs_dil = (1, dil)
        out = lax.conv_general_dilated(
            y, w_oihw, (1, 1), padding, rhs_dilation=rhs_dil,
            dimension_numbers=("NCHW", "OIHW", "NCHW"))
        return out + bias.reshape(1, -1, 1, 1)

    def bn(y, s, t):
        return y * s.reshape(1, -1, 1, 1) + t.reshape(1, -1, 1, 1)

    y = conv(x_nchw, p["w1a"], p["b1a"][0], 0, 1)
    y = jnp.maximum(y, 0.0)
    y = conv(y, p["w1b"], p["b1b"][0], 1, 1)
    y = bn(y, p["s1"][0], p["t1"][0])
    y = jnp.maximum(y, 0.0)
    y = conv(y, p["w2a"], p["b2a"][0], 0, dilated)
    y = jnp.maximum(y, 0.0)
    y = conv(y, p["w2b"], p["b2b"][0], 1, dilated)
    y = bn(y, p["s2"][0], p["t2"][0])
    return y


def _init_params(key, cin, cout, k):
    ks = jax.random.split(key, 16)
    scale = 0.2

    def w(subkey, shape):
        return (scale * jax.random.normal(subkey, shape)).astype(jnp.float32)

    def bn_fold(g, b, mean, var, eps=1e-3):
        s = g / jnp.sqrt(var + eps)
        t = b - mean * s
        return s.reshape(1, -1).astype(jnp.float32), t.reshape(1, -1).astype(jnp.float32)

    p = {
        # weights stored as (k, Cin, Cout) per-tap matmul form
        "w1a": w(ks[0], (k, cin, cout)), "b1a": w(ks[1], (1, cout)),
        "w1b": w(ks[2], (k, cout, cout)), "b1b": w(ks[3], (1, cout)),
        "w2a": w(ks[4], (k, cout, cout)), "b2a": w(ks[5], (1, cout)),
        "w2b": w(ks[6], (k, cout, cout)), "b2b": w(ks[7], (1, cout)),
    }
    g1 = 1.0 + 0.1 * jax.random.normal(ks[8], (cout,))
    b1 = 0.1 * jax.random.normal(ks[9], (cout,))
    m1 = 0.1 * jax.random.normal(ks[10], (cout,))
    v1 = jnp.abs(1.0 + 0.1 * jax.random.normal(ks[11], (cout,)))
    g2 = 1.0 + 0.1 * jax.random.normal(ks[12], (cout,))
    b2 = 0.1 * jax.random.normal(ks[13], (cout,))
    m2 = 0.1 * jax.random.normal(ks[14], (cout,))
    v2 = jnp.abs(1.0 + 0.1 * jax.random.normal(ks[15], (cout,)))
    p["s1"], p["t1"] = bn_fold(g1, b1, m1, v1)
    p["s2"], p["t2"] = bn_fold(g2, b2, m2, v2)
    return p


if __name__ == "__main__":
    # nonBt1dMain(inChannel=8, outChannel=8, kSize=3, dropout=0.0, prelus=False, dilated=2)
    N, C, H, W = 2, 8, 16, 16
    K_SIZE, DILATED = 3, 2

    key = jax.random.PRNGKey(0)
    kx, kp = jax.random.split(key)
    x = jax.random.normal(kx, (N, C, H, W), dtype=jnp.float32)  # NCHW, like PyTorch
    params = _init_params(kp, C, C, K_SIZE)

    ipb = _pick_images_per_block(N, H * W)  # resolve outside jit (device query)
    run = jax.jit(functools.partial(non_bt1d_main, k=K_SIZE, dilated=DILATED,
                                    images_per_block=ipb))
    out = run(x, params)
    out = jax.block_until_ready(out)

    ref = _ref_forward(x, params, K_SIZE, DILATED)
    assert out.shape == (N, C, H, W), out.shape
    assert jnp.allclose(out, ref, rtol=1e-4, atol=1e-4), float(jnp.max(jnp.abs(out - ref)))

    print("KERNEL_OK")
</pallas_src>

<mosaic_0001>
module attributes {stable_mosaic.version = 11 : i64} {
  func.func @kernel(%arg0: i32, %arg1: memref<8x512xf32, #tpu.memory_space<vmem>>, %arg2: memref<4x24x8xf32, #tpu.memory_space<vmem>>, %arg3: memref<8x4xf32, #tpu.memory_space<vmem>>, %arg4: memref<8x512xf32, #tpu.memory_space<vmem>>) attributes {dimension_semantics = [#tpu.dimension_semantics<parallel>], iteration_bounds = array<i64: 1>, scalar_prefetch = 0 : i64, scratch_operands = 0 : i64, tpu.core_type = #tpu.core_type<tc>, window_params = [{transform_indices = @transform_0, window_bounds = array<i64: 8, 512>}, {pipeline_mode = #tpu.pipeline_mode<synchronous>, transform_indices = @transform_1, window_bounds = array<i64: 4, 24, 8>}, {pipeline_mode = #tpu.pipeline_mode<synchronous>, transform_indices = @transform_2, window_bounds = array<i64: 8, 4>}, {transform_indices = @transform_3, window_bounds = array<i64: 8, 512>}]} {
    %0 = tpu.iota {dimensions = array<i32: 1>} : vector<8x512xi32>
    %c255_i32 = arith.constant 255 : i32
    %1 = vector.broadcast %c255_i32 : i32 to vector<8x512xi32>
    %2 = arith.andi %0, %1 : vector<8x512xi32>
    %c15_i32 = arith.constant 15 : i32
    %3 = vector.broadcast %c15_i32 : i32 to vector<8x512xi32>
    %4 = arith.andi %0, %3 : vector<8x512xi32>
    %c0 = arith.constant 0 : index
    %c0_0 = arith.constant 0 : index
    %c0_1 = arith.constant 0 : index
    %5 = vector.load %arg2[%c0, %c0_0, %c0_1] : memref<4x24x8xf32, #tpu.memory_space<vmem>>, vector<4x24x8xf32>
    %c0_2 = arith.constant 0 : index
    %c0_3 = arith.constant 0 : index
    %6 = vector.load %arg3[%c0_2, %c0_3] : memref<8x4xf32, #tpu.memory_space<vmem>>, vector<8x4xf32>
    %7 = vector.extract_strided_slice %6 {offsets = [0, 0], sizes = [8, 1], strides = [1, 1]} : vector<8x4xf32> to vector<8x1xf32>
    %8 = vector.extract_strided_slice %6 {offsets = [0, 1], sizes = [8, 1], strides = [1, 1]} : vector<8x4xf32> to vector<8x1xf32>
    %9 = vector.extract_strided_slice %6 {offsets = [0, 2], sizes = [8, 1], strides = [1, 1]} : vector<8x4xf32> to vector<8x1xf32>
    %10 = vector.extract_strided_slice %6 {offsets = [0, 3], sizes = [8, 1], strides = [1, 1]} : vector<8x4xf32> to vector<8x1xf32>
    %c0_4 = arith.constant 0 : index
    %c0_5 = arith.constant 0 : index
    %11 = vector.load %arg1[%c0_4, %c0_5] : memref<8x512xf32, #tpu.memory_space<vmem>>, vector<8x512xf32>
    %12 = vector.extract_strided_slice %5 {offsets = [0, 0, 0], sizes = [1, 24, 8], strides = [1, 1, 1]} : vector<4x24x8xf32> to vector<1x24x8xf32>
    %13 = vector.shape_cast %12 : vector<1x24x8xf32> to vector<24x8xf32>
    %cst = arith.constant dense<0.000000e+00> : vector<24x512xf32>
    %14 = tpu.matmul %13, %11, %cst {dimension_numbers = #tpu.dot_dimension_numbers<[1], [0], [0], [1], [0, 0, 1, 1], [], []>} : vector<24x8xf32>, vector<8x512xf32>, vector<24x512xf32> -> vector<24x512xf32>
    %15 = vector.extract_strided_slice %14 {offsets = [0, 0], sizes = [8, 512], strides = [1, 1]} : vector<24x512xf32> to vector<8x512xf32>
    %c16_i32 = arith.constant 16 : i32
    %16 = tpu.dynamic_rotate %15 by %c16_i32 dim 1 : vector<8x512xf32>, i32 -> vector<8x512xf32>
    %c16_i32_6 = arith.constant 16 : i32
    %17 = vector.broadcast %c16_i32_6 : i32 to vector<8x512xi32>
    %18 = arith.cmpi sge, %2, %17 : vector<8x512xi32>
    %cst_7 = arith.constant 0.000000e+00 : f32
    %19 = vector.broadcast %cst_7 : f32 to vector<8x512xf32>
    %20 = arith.select %18, %16, %19 : vector<8x512xi1>, vector<8x512xf32>
    %21 = vector.extract_strided_slice %14 {offsets = [8, 0], sizes = [8, 512], strides = [1, 1]} : vector<24x512xf32> to vector<8x512xf32>
    %22 = arith.addf %20, %21 : vector<8x512xf32>
    %23 = vector.extract_strided_slice %14 {offsets = [16, 0], sizes = [8, 512], strides = [1, 1]} : vector<24x512xf32> to vector<8x512xf32>
    %c496_i32 = arith.constant 496 : i32
    %24 = tpu.dynamic_rotate %23 by %c496_i32 dim 1 : vector<8x512xf32>, i32 -> vector<8x512xf32>
    %c240_i32 = arith.constant 240 : i32
    %25 = vector.broadcast %c240_i32 : i32 to vector<8x512xi32>
    %26 = arith.cmpi slt, %2, %25 : vector<8x512xi32>
    %cst_8 = arith.constant 0.000000e+00 : f32
    %27 = vector.broadcast %cst_8 : f32 to vector<8x512xf32>
    %28 = arith.select %26, %24, %27 : vector<8x512xi1>, vector<8x512xf32>
    %29 = arith.addf %22, %28 : vector<8x512xf32>
    %30 = vector.broadcast %7 : vector<8x1xf32> to vector<8x512xf32>
    %31 = arith.addf %29, %30 : vector<8x512xf32>
    %cst_9 = arith.constant 0.000000e+00 : f32
    %32 = vector.broadcast %cst_9 : f32 to vector<8x512xf32>
    %33 = arith.maximumf %31, %32 : vector<8x512xf32>
    %34 = vector.extract_strided_slice %5 {offsets = [1, 0, 0], sizes = [1, 24, 8], strides = [1, 1, 1]} : vector<4x24x8xf32> to vector<1x24x8xf32>
    %35 = vector.shape_cast %34 : vector<1x24x8xf32> to vector<24x8xf32>
    %cst_10 = arith.constant dense<0.000000e+00> : vector<24x512xf32>
    %36 = tpu.matmul %35, %33, %cst_10 {dimension_numbers = #tpu.dot_dimension_numbers<[1], [0], [0], [1], [0, 0, 1, 1], [], []>} : vector<24x8xf32>, vector<8x512xf32>, vector<24x512xf32> -> vector<24x512xf32>
    %37 = vector.extract_strided_slice %36 {offsets = [0, 0], sizes = [8, 512], strides = [1, 1]} : vector<24x512xf32> to vector<8x512xf32>
    %c1_i32 = arith.constant 1 : i32
    %38 = tpu.dynamic_rotate %37 by %c1_i32 dim 1 : vector<8x512xf32>, i32 -> vector<8x512xf32>
    %c1_i32_11 = arith.constant 1 : i32
    %39 = vector.broadcast %c1_i32_11 : i32 to vector<8x512xi32>
    %40 = arith.cmpi sge, %4, %39 : vector<8x512xi32>
    %cst_12 = arith.constant 0.000000e+00 : f32
    %41 = vector.broadcast %cst_12 : f32 to vector<8x512xf32>
    %42 = arith.select %40, %38, %41 : vector<8x512xi1>, vector<8x512xf32>
    %43 = vector.extract_strided_slice %36 {offsets = [8, 0], sizes = [8, 512], strides = [1, 1]} : vector<24x512xf32> to vector<8x512xf32>
    %44 = arith.addf %42, %43 : vector<8x512xf32>
    %45 = vector.extract_strided_slice %36 {offsets = [16, 0], sizes = [8, 512], strides = [1, 1]} : vector<24x512xf32> to vector<8x512xf32>
    %c511_i32 = arith.constant 511 : i32
    %46 = tpu.dynamic_rotate %45 by %c511_i32 dim 1 : vector<8x512xf32>, i32 -> vector<8x512xf32>
    %c15_i32_13 = arith.constant 15 : i32
    %47 = vector.broadcast %c15_i32_13 : i32 to vector<8x512xi32>
    %48 = arith.cmpi slt, %4, %47 : vector<8x512xi32>
    %cst_14 = arith.constant 0.000000e+00 : f32
    %49 = vector.broadcast %cst_14 : f32 to vector<8x512xf32>
    %50 = arith.select %48, %46, %49 : vector<8x512xi1>, vector<8x512xf32>
    %51 = arith.addf %44, %50 : vector<8x512xf32>
    %52 = vector.broadcast %8 : vector<8x1xf32> to vector<8x512xf32>
    %53 = arith.addf %51, %52 : vector<8x512xf32>
    %cst_15 = arith.constant 0.000000e+00 : f32
    %54 = vector.broadcast %cst_15 : f32 to vector<8x512xf32>
    %55 = arith.maximumf %53, %54 : vector<8x512xf32>
    %56 = vector.extract_strided_slice %5 {offsets = [2, 0, 0], sizes = [1, 24, 8], strides = [1, 1, 1]} : vector<4x24x8xf32> to vector<1x24x8xf32>
    %57 = vector.shape_cast %56 : vector<1x24x8xf32> to vector<24x8xf32>
    %cst_16 = arith.constant dense<0.000000e+00> : vector<24x512xf32>
    %58 = tpu.matmul %57, %55, %cst_16 {dimension_numbers = #tpu.dot_dimension_numbers<[1], [0], [0], [1], [0, 0, 1, 1], [], []>} : vector<24x8xf32>, vector<8x512xf32>, vector<24x512xf32> -> vector<24x512xf32>
    %59 = vector.extract_strided_slice %58 {offsets = [0, 0], sizes = [8, 512], strides = [1, 1]} : vector<24x512xf32> to vector<8x512xf32>
    %c32_i32 = arith.constant 32 : i32
    %60 = tpu.dynamic_rotate %59 by %c32_i32 dim 1 : vector<8x512xf32>, i32 -> vector<8x512xf32>
    %c32_i32_17 = arith.constant 32 : i32
    %61 = vector.broadcast %c32_i32_17 : i32 to vector<8x512xi32>
    %62 = arith.cmpi sge, %2, %61 : vector<8x512xi32>
    %cst_18 = arith.constant 0.000000e+00 : f32
    %63 = vector.broadcast %cst_18 : f32 to vector<8x512xf32>
    %64 = arith.select %62, %60, %63 : vector<8x512xi1>, vector<8x512xf32>
    %65 = vector.extract_strided_slice %58 {offsets = [8, 0], sizes = [8, 512], strides = [1, 1]} : vector<24x512xf32> to vector<8x512xf32>
    %66 = arith.addf %64, %65 : vector<8x512xf32>
    %67 = vector.extract_strided_slice %58 {offsets = [16, 0], sizes = [8, 512], strides = [1, 1]} : vector<24x512xf32> to vector<8x512xf32>
    %c480_i32 = arith.constant 480 : i32
    %68 = tpu.dynamic_rotate %67 by %c480_i32 dim 1 : vector<8x512xf32>, i32 -> vector<8x512xf32>
    %c224_i32 = arith.constant 224 : i32
    %69 = vector.broadcast %c224_i32 : i32 to vector<8x512xi32>
    %70 = arith.cmpi slt, %2, %69 : vector<8x512xi32>
    %cst_19 = arith.constant 0.000000e+00 : f32
    %71 = vector.broadcast %cst_19 : f32 to vector<8x512xf32>
    %72 = arith.select %70, %68, %71 : vector<8x512xi1>, vector<8x512xf32>
    %73 = arith.addf %66, %72 : vector<8x512xf32>
    %74 = vector.broadcast %9 : vector<8x1xf32> to vector<8x512xf32>
    %75 = arith.addf %73, %74 : vector<8x512xf32>
    %cst_20 = arith.constant 0.000000e+00 : f32
    %76 = vector.broadcast %cst_20 : f32 to vector<8x512xf32>
    %77 = arith.maximumf %75, %76 : vector<8x512xf32>
    %78 = vector.extract_strided_slice %5 {offsets = [3, 0, 0], sizes = [1, 24, 8], strides = [1, 1, 1]} : vector<4x24x8xf32> to vector<1x24x8xf32>
    %79 = vector.shape_cast %78 : vector<1x24x8xf32> to vector<24x8xf32>
    %cst_21 = arith.constant dense<0.000000e+00> : vector<24x512xf32>
    %80 = tpu.matmul %79, %77, %cst_21 {dimension_numbers = #tpu.dot_dimension_numbers<[1], [0], [0], [1], [0, 0, 1, 1], [], []>} : vector<24x8xf32>, vector<8x512xf32>, vector<24x512xf32> -> vector<24x512xf32>
    %81 = vector.extract_strided_slice %80 {offsets = [0, 0], sizes = [8, 512], strides = [1, 1]} : vector<24x512xf32> to vector<8x512xf32>
    %c2_i32 = arith.constant 2 : i32
    %82 = tpu.dynamic_rotate %81 by %c2_i32 dim 1 : vector<8x512xf32>, i32 -> vector<8x512xf32>
    %c2_i32_22 = arith.constant 2 : i32
    %83 = vector.broadcast %c2_i32_22 : i32 to vector<8x512xi32>
    %84 = arith.cmpi sge, %4, %83 : vector<8x512xi32>
    %cst_23 = arith.constant 0.000000e+00 : f32
    %85 = vector.broadcast %cst_23 : f32 to vector<8x512xf32>
    %86 = arith.select %84, %82, %85 : vector<8x512xi1>, vector<8x512xf32>
    %87 = vector.extract_strided_slice %80 {offsets = [8, 0], sizes = [8, 512], strides = [1, 1]} : vector<24x512xf32> to vector<8x512xf32>
    %88 = arith.addf %86, %87 : vector<8x512xf32>
    %89 = vector.extract_strided_slice %80 {offsets = [16, 0], sizes = [8, 512], strides = [1, 1]} : vector<24x512xf32> to vector<8x512xf32>
    %c510_i32 = arith.constant 510 : i32
    %90 = tpu.dynamic_rotate %89 by %c510_i32 dim 1 : vector<8x512xf32>, i32 -> vector<8x512xf32>
    %c14_i32 = arith.constant 14 : i32
    %91 = vector.broadcast %c14_i32 : i32 to vector<8x512xi32>
    %92 = arith.cmpi slt, %4, %91 : vector<8x512xi32>
    %cst_24 = arith.constant 0.000000e+00 : f32
    %93 = vector.broadcast %cst_24 : f32 to vector<8x512xf32>
    %94 = arith.select %92, %90, %93 : vector<8x512xi1>, vector<8x512xf32>
    %95 = arith.addf %88, %94 : vector<8x512xf32>
    %96 = vector.broadcast %10 : vector<8x1xf32> to vector<8x512xf32>
    %97 = arith.addf %95, %96 : vector<8x512xf32>
    %c0_25 = arith.constant 0 : index
    %c0_26 = arith.constant 0 : index
    %98 = vector.load %arg4[%c0_25, %c0_26] : memref<8x512xf32, #tpu.memory_space<vmem>>, vector<8x512xf32>
    tpu.vector_store %arg4[%c0_25, %c0_26], %97 {strides = array<i32>} : memref<8x512xf32, #tpu.memory_space<vmem>>, vector<8x512xf32>,
    return
  }
  func.func @transform_0(%arg0: i32) -> (i32, i32) {
    %c0_i32 = arith.constant 0 : i32
    %c0_i32_0 = arith.constant 0 : i32
    return %c0_i32, %arg0 : i32, i32
  }
  func.func @transform_1(%arg0: i32) -> (i32, i32, i32) {
    %c0_i32 = arith.constant 0 : i32
    %c0_i32_0 = arith.constant 0 : i32
    %c0_i32_1 = arith.constant 0 : i32
    %c0_i32_2 = arith.constant 0 : i32
    return %c0_i32, %c0_i32_0, %c0_i32_1 : i32, i32, i32
  }
  func.func @transform_2(%arg0: i32) -> (i32, i32) {
    %c0_i32 = arith.constant 0 : i32
    %c0_i32_0 = arith.constant 0 : i32
    %c0_i32_1 = arith.constant 0 : i32
    return %c0_i32, %c0_i32_0 : i32, i32
  }
  func.func @transform_3(%arg0: i32) -> (i32, i32) {
    %c0_i32 = arith.constant 0 : i32
    %c0_i32_0 = arith.constant 0 : i32
    return %c0_i32, %arg0 : i32, i32
  }
}

</mosaic_0001>

<bundles_post_ra>
// kernel: non_bt1d_main.1
= control target key start
LH: loop header
LB: loop body
LE: loop exit
PB: predicated region body
PF: predicated region fallthrough
CT: control target
= control target key end

     0   :  { %vm44_vm0 = vcmask 64512   ;;  %v815_v7 = vmov 0   ;;  %s816_s25 = smov 16   ;;  %s817_s26 = smov 112   ;;  %v14_v21 = vlaneseq  ;;  %s1119_s0 = inlined_call_operand.vmem [shape: f32[8,512], index: 0, kind: input, shape index: {}]   ;;  %s1120_s1 = inlined_call_operand.vmem [shape: f32[4,24,8], index: 1, kind: input, shape index: {}]   ;;  %s1121_s2 = inlined_call_operand.vmem [shape: f32[8,4], index: 2, kind: input, shape index: {}]   ;;  %s1122_s3 = inlined_call_operand.vmem [shape: f32[8,512], index: 3, kind: output, shape index: {}]  }
   0x1   :  { %v40_v0 = vld [vmem:[%s1119_s0] sm:$0xff]  ;;  %v41_v1 = vld [vmem:[%s1119_s0 + $0x8] sm:$0xff]  ;;  %v43_v2 = vld [vmem:[%s1119_s0 + $0x18] sm:$0xff]  ;;  %810 = vset.pattern.permute.xlu1 %v815_v7  ;;  %s819_s7 = smov 1   ;;  %s820_s8 = smov 127  }
   0x2   :  { %69 = vmatpush.msra.mxu0 %v40_v0  ;;  %95 = vmatpush.msra.mxu1 %v41_v1  ;;  %v27_v3 = vld [vmem:[%s1120_s1] sm:$0xff]  ;;  %v42_v4 = vld [vmem:[%s1119_s0 + $0x10] sm:$0xff]  ;;  %v28_v5 = vld [vmem:[%s1120_s1 + $0x8] sm:$0xff]  ;;  %v886_v24 = vand.u32 127, %v14_v21  ;;  %s822_s15 = smov 32   ;;  %s823_s16 = smov 96  }
   0x3   :  { %147 = vmatpush.msra.mxu3 %v43_v2  ;;  %750 = vmatmul.msk.f32.vlgmr.msra.gmra.mxu0 %vm44_vm0, %v27_v3  ;;  %v29_v6 = vld [vmem:[%s1120_s1 + $0x10] sm:$0xff]  ;;  %v883_v16 = vld [vmem:[%s1121_s2] sm:$0xff]  ;;  %v32_v7 = vld [vmem:[%s1120_s1 + $0x28] sm:$0xff]  ;;  %s825_s23 = smov 2  }
   0x4   :  { %753 = vmatmul.msk.f32.vlgmr.msra.gmra.mxu1 %vm44_vm0, %v27_v3  ;;  %759 = vmatmul.msk.f32.vlgmr.msra.gmra.mxu3 %vm44_vm0, %v27_v3  ;;  %v889_v25 = vadd.s32 256, %v886_v24  ;;  %v893_v30 = vadd.s32 384, %v886_v24  ;;  %vm166_vm1 = vcmp.lt.s32.totalorder %v886_v24, 16  ;;  %v897_v31 = vadd.s32 128, %v886_v24 }
   0x5   :  { %121 = vmatpush.msra.mxu2 %v42_v4  ;;  %v19_v32 = vand.u32 255, %v886_v24  ;;  %vm191_vm3 = vcmp.lt.s32.totalorder %v886_v24, 112  ;;  %vm342_vm7 = vcmp.lt.s32.totalorder %v886_v24, 1  ;;  %vm367_vm10 = vcmp.lt.s32.totalorder %v886_v24, 127 }
   0x6   :  { %756 = vmatmul.msk.f32.vlgmr.msra.gmra.mxu2 %vm44_vm0, %v27_v3  ;;  %v21_v28 = vand.u32 255, %v889_v25  ;;  %v22_v35 = vand.u32 255, %v893_v30  ;;  %v20_v36 = vand.u32 255, %v897_v31  ;;  %v962_v33 = vand.u32 15, %v889_v25 }
   0x7   :  { %vm171_vm4 = vcmp.ge.s32.totalorder %v19_v32, 16 }
   0x8   :  { %vm902_vm2 = vcmp.ge.s32.totalorder %v21_v28, 16  ;;  %vm917_vm5 = vcmp.lt.s32.totalorder %v22_v35, 240  ;;  %vm197_vm6 = vcmp.lt.s32.totalorder %v20_v36, 240  ;;  %vm349_vm8 = vcmp.ge.s32.totalorder %v962_v33, 1 }
   0x9   :  { %vm374_vm13 = vcmp.lt.s32.totalorder %v962_v33, 15 }
   0xb   :  { %751 = vmatmul.msk.f32.gmra.mxu0 %vm44_vm0, %v28_v5 }
   0xc   :  { %760 = vmatmul.msk.f32.gmra.mxu3 %vm44_vm0, %v28_v5  ;;  %754 = vmatmul.msk.f32.gmra.mxu1 %vm44_vm0, %v28_v5 }
   0xe   :  { %757 = vmatmul.msk.f32.gmra.mxu2 %vm44_vm0, %v28_v5  ;;  %v30_v5 = vld [vmem:[%s1120_s1 + $0x18] sm:$0xff] }
  0x13   :  { %752 = vmatmul.msk.f32.gmra.mxu0 %vm44_vm0, %v29_v6 }
  0x14   :  { %761 = vmatmul.msk.f32.gmra.mxu3 %vm44_vm0, %v29_v6  ;;  %755 = vmatmul.msk.f32.gmra.mxu1 %vm44_vm0, %v29_v6 }
  0x16   :  { %758 = vmatmul.msk.f32.gmra.mxu2 %vm44_vm0, %v29_v6  ;;  %v31_v6 = vld [vmem:[%s1120_s1 + $0x20] sm:$0xff] }
  0x80   :  { %v71_v8 = vpop.f32.mrf.mxu0 }
  0x81   :  { %v97_v9 = vpop.f32.mrf.mxu1 }
  0x82   :  { %160 = vrot.lane.b32.xlu0 %v97_v9, %s816_s25 }
  0x87   :  { %v149_v10 = vpop.f32.mrf.mxu3 }
  0x88   :  { %v74_v11 = vpop.f32.mrf.mxu0  ;;  %164 = vrot.lane.b32.xlu1 %v149_v10, %s816_s25 }
  0x89   :  { %v123_v12 = vpop.f32.mrf.mxu2  ;;  %v100_v18 = vpop.f32.mrf.mxu1 }
  0x8a   :  { %162 = vrot.lane.b32.xlu0 %v123_v12, %s816_s25 }
  0x8f   :  { %v152_v13 = vpop.f32.mrf.mxu3 }
  0x90   :  { %v77_v14 = vpop.f32.mrf.mxu0 }
  0x91   :  { %183 = vrot.lane.b32.xlu1 %v77_v14, %s817_s26  ;;  %v126_v15 = vpop.f32.mrf.mxu2  ;;  %v103_v20 = vpop.f32.mrf.mxu1 }
  0x92   :  { %158 = vrot.lane.b32.xlu0 %v71_v8, %s816_s25  ;;  %v818_v8 = vmov 1  }
  0x97   :  { %v155_v17 = vpop.f32.mrf.mxu3 }
  0x98   :  { %189 = vrot.lane.b32.xlu2 %v155_v17, %s817_s26 }
  0x99   :  { %210 = vperm.xlu1 %810, %v883_v16   ;;  %v129_v19 = vpop.f32.mrf.mxu2 }
  0xa0   :  { %187 = vrot.lane.b32.xlu2 %v129_v19, %s817_s26 }
  0xa1   :  { %811 = vset.pattern.permute.xlu1 %v818_v8 }
  0xa8   :  { %185 = vrot.lane.b32.xlu2 %v103_v20, %s817_s26 }
  0xf2   :  { %v190_v22 = vpop.permute.xlu2 %189 }
  0xf4   :  { %v161_v23 = vpop.permute.xlu0 %160 }
  0xfa   :  { %v188_v26 = vpop.permute.xlu2 %187  ;;  %v165_v27 = vpop.permute.xlu1 %164 }
  0xfb   :  { %v192_v53 = vsel %vm191_vm3, %v188_v26, %v190_v22 }
  0xfc   :  { %v163_v29 = vpop.permute.xlu0 %162 }
  0xfd   :  { %v168_v34 = vsel %vm166_vm1, %v161_v23, %v163_v29  ;;  %v167_v43 = vsel %vm166_vm1, %v163_v29, %v165_v27 }
  0xfe   :  { %v177_v37 = vsel %vm902_vm2, %v168_v34, 0.0  ;;  %v182_v52 = vadd.f32 %v167_v43, %v152_v13  ;;  %v965_v34 = vand.u32 15, %v893_v30  ;;  %vm517_vm2 = vcmp.lt.s32.totalorder %v886_v24, 32 }
  0xff   :  { %v181_v46 = vadd.f32 %v177_v37, %v126_v15  ;;  %v968_v37 = vand.u32 15, %v897_v31 }
 0x100   :  { %vm350_vm9 = vcmp.ge.s32.totalorder %v965_v34, 1  ;;  %vm375_vm14 = vcmp.lt.s32.totalorder %v965_v34, 15 }
 0x101   :  { %v206_v59 = vadd.f32 %v192_v53, %v181_v46  ;;  %vm373_vm11 = vcmp.lt.s32.totalorder %v968_v37, 15 }
 0x102   :  { %v186_v38 = vpop.permute.xlu2 %185 }
 0x103   :  { %v184_v39 = vpop.permute.xlu1 %183  ;;  %v193_v47 = vsel %vm191_vm3, %v186_v38, %v188_v26 }
 0x104   :  { %v159_v40 = vpop.permute.xlu0 %158  ;;  %v195_v42 = vsel %vm191_vm3, %v190_v22, %v184_v39  ;;  %v201_v54 = vsel %vm197_vm6, %v193_v47, 0.0  ;;  %v194_v55 = vsel %vm191_vm3, %v184_v39, %v186_v38  ;;  %v972_v38 = vand.u32 15, %v886_v24 }
 0x105   :  { %v169_v44 = vsel %vm166_vm1, %v159_v40, %v161_v23  ;;  %v170_v45 = vsel %vm166_vm1, %v165_v27, %v159_v40  ;;  %v203_v51 = vsel %vm917_vm5, %v195_v42, 0.0  ;;  %vm348_vm1 = vcmp.ge.s32.totalorder %v968_v37, 1 }
 0x106   :  { %v175_v48 = vsel %vm171_vm4, %v170_v45, 0.0  ;;  %v180_v49 = vadd.f32 %v169_v44, %v100_v18  ;;  %v207_v57 = vadd.f32 %v203_v51, %v182_v52  ;;  %vm372_vm12 = vcmp.lt.s32.totalorder %v972_v38, 15 }
 0x107   :  { %v179_v50 = vadd.f32 %v175_v48, %v74_v11  ;;  %vm347_vm15 = vcmp.ge.s32.totalorder %v972_v38, 1  ;;  %vm1026_vm3 = vcmp.ge.s32.totalorder %v21_v28, 32  ;;  %vm542_vm4 = vcmp.lt.s32.totalorder %v886_v24, 96 }
 0x108   :  { %v205_v58 = vadd.f32 %v201_v54, %v180_v49  ;;  %vm522_vm5 = vcmp.ge.s32.totalorder %v19_v32, 32  ;;  %vm1035_vm6 = vcmp.lt.s32.totalorder %v20_v36, 224 }
 0x109   :  { %v204_v56 = vadd.f32 %v194_v55, %v179_v50 }
 0x10b   :  { %v211_v60 = vpop.permute.xlu1 %210 }
 0x10c   :  { %v213_v61 = vadd.f32 %v211_v60, %v204_v56  ;;  %v214_v62 = vadd.f32 %v211_v60, %v205_v58  ;;  %v215_v63 = vadd.f32 %v211_v60, %v206_v59  ;;  %v216_v0 = vadd.f32 %v211_v60, %v207_v57 }
 0x10e   :  { %v217_v1 = vmax.f32 %v213_v61, 0.0  ;;  %v218_v2 = vmax.f32 %v214_v62, 0.0  ;;  %v219_v3 = vmax.f32 %v215_v63, 0.0  ;;  %v220_v4 = vmax.f32 %v216_v0, 0.0 }
 0x110   :  { %245 = vmatpush.msrb.mxu0 %v217_v1  ;;  %271 = vmatpush.msrb.mxu1 %v218_v2 }
 0x111   :  { %297 = vmatpush.msrb.mxu2 %v219_v3  ;;  %323 = vmatpush.msrb.mxu3 %v220_v4 }
 0x112   :  { %762 = vmatmul.msk.f32.vlgmr.msrb.gmra.mxu0 %vm44_vm0, %v30_v5  ;;  %768 = vmatmul.msk.f32.vlgmr.msrb.gmra.mxu2 %vm44_vm0, %v30_v5 }
 0x113   :  { %771 = vmatmul.msk.f32.vlgmr.msrb.gmra.mxu3 %vm44_vm0, %v30_v5  ;;  %765 = vmatmul.msk.f32.vlgmr.msrb.gmra.mxu1 %vm44_vm0, %v30_v5 }
 0x11a   :  { %763 = vmatmul.msk.f32.gmra.mxu0 %vm44_vm0, %v31_v6  ;;  %769 = vmatmul.msk.f32.gmra.mxu2 %vm44_vm0, %v31_v6 }
 0x11b   :  { %772 = vmatmul.msk.f32.gmra.mxu3 %vm44_vm0, %v31_v6  ;;  %766 = vmatmul.msk.f32.gmra.mxu1 %vm44_vm0, %v31_v6 }
 0x122   :  { %764 = vmatmul.msk.f32.gmra.mxu0 %vm44_vm0, %v32_v7  ;;  %770 = vmatmul.msk.f32.gmra.mxu2 %vm44_vm0, %v32_v7 }
 0x123   :  { %773 = vmatmul.msk.f32.gmra.mxu3 %vm44_vm0, %v32_v7  ;;  %767 = vmatmul.msk.f32.gmra.mxu1 %vm44_vm0, %v32_v7 }
 0x18f   :  { %v247_v9 = vpop.f32.mrf.mxu0 }
 0x190   :  { %v273_v10 = vpop.f32.mrf.mxu1 }
 0x191   :  { %336 = vrot.lane.b32.xlu2 %v273_v10, %s819_s7 }
 0x195   :  { %v299_v11 = vpop.f32.mrf.mxu2 }
 0x196   :  { %v325_v12 = vpop.f32.mrf.mxu3  ;;  %338 = vrot.lane.b32.xlu0 %v299_v11, %s819_s7  ;;  %v33_v11 = vld [vmem:[%s1120_s1 + $0x30] sm:$0xff] }
 0x197   :  { %340 = vrot.lane.b32.xlu1 %v325_v12, %s819_s7  ;;  %v250_v13 = vpop.f32.mrf.mxu0  ;;  %v34_v12 = vld [vmem:[%s1120_s1 + $0x38] sm:$0xff] }
 0x198   :  { %v276_v18 = vpop.f32.mrf.mxu1 }
 0x19d   :  { %v302_v14 = vpop.f32.mrf.mxu2 }
 0x19e   :  { %v328_v15 = vpop.f32.mrf.mxu3 }
 0x19f   :  { %v253_v17 = vpop.f32.mrf.mxu0 }
 0x1a0   :  { %359 = vrot.lane.b32.xlu0 %v253_v17, %s820_s8  ;;  %v279_v21 = vpop.f32.mrf.mxu1 }
 0x1a5   :  { %v305_v19 = vpop.f32.mrf.mxu2 }
 0x1a6   :  { %v331_v20 = vpop.f32.mrf.mxu3  ;;  %363 = vrot.lane.b32.xlu2 %v305_v19, %s820_s8 }
 0x1a7   :  { %365 = vrot.lane.b32.xlu1 %v331_v20, %s820_s8 }
 0x1a8   :  { %334 = vrot.lane.b32.xlu0 %v247_v9, %s819_s7 }
 0x1ae   :  { %361 = vrot.lane.b32.xlu2 %v279_v21, %s820_s8 }
 0x1af   :  { %385 = vperm.xlu1 %811, %v883_v16  }
 0x1eb   :  { %v337_v22 = vpop.permute.xlu2 %336 }
 0x200   :  { %v364_v26 = vpop.permute.xlu2 %363 }
 0x208   :  { %v339_v23 = vpop.permute.xlu0 %338  ;;  %v362_v41 = vpop.permute.xlu2 %361 }
 0x209   :  { %v341_v27 = vpop.permute.xlu1 %340  ;;  %v344_v39 = vsel %vm342_vm7, %v337_v22, %v339_v23  ;;  %v369_v44 = vsel %vm367_vm10, %v362_v41, %v364_v26 }
 0x20a   :  { %v343_v40 = vsel %vm342_vm7, %v339_v23, %v341_v27  ;;  %v353_v43 = vsel %vm349_vm8, %v344_v39, 0.0  ;;  %v377_v60 = vsel %vm373_vm11, %v369_v44, 0.0  ;;  %vm697_vm8 = vcmp.ge.s32.totalorder %v972_v38, 2 }
 0x20b   :  { %v354_v48 = vsel %vm350_vm9, %v343_v40, 0.0  ;;  %v357_v58 = vadd.f32 %v353_v43, %v302_v14  ;;  %v821_v14 = vmov 2   ;;  %vm717_vm9 = vcmp.lt.s32.totalorder %v886_v24, 126 }
 0x20c   :  { %v358_v59 = vadd.f32 %v354_v48, %v328_v15  ;;  %812 = vset.pattern.permute.xlu1 %v821_v14  ;;  %vm698_vm11 = vcmp.ge.s32.totalorder %v968_v37, 2 }
 0x212   :  { %v360_v29 = vpop.permute.xlu0 %359 }
 0x213   :  { %v370_v49 = vsel %vm367_vm10, %v360_v29, %v362_v41 }
 0x214   :  { %v376_v61 = vsel %vm372_vm12, %v370_v49, 0.0  ;;  %vm699_vm12 = vcmp.ge.s32.totalorder %v962_v33, 2 }
 0x219   :  { %v366_v42 = vpop.permute.xlu1 %365 }
 0x21a   :  { %v368_v45 = vsel %vm367_vm10, %v364_v26, %v366_v42  ;;  %v371_v46 = vsel %vm367_vm10, %v366_v42, %v360_v29  ;;  %v335_v47 = vpop.permute.xlu0 %334  ;;  %vm722_vm10 = vcmp.lt.s32.totalorder %v972_v38, 14 }
 0x21b   :  { %v345_v50 = vsel %vm342_vm7, %v335_v47, %v337_v22  ;;  %v346_v51 = vsel %vm342_vm7, %v341_v27, %v335_v47  ;;  %v378_v54 = vsel %vm374_vm13, %v368_v45, 0.0  ;;  %v379_v55 = vsel %vm375_vm14, %v371_v46, 0.0 }
 0x21c   :  { %v351_v52 = vsel %vm347_vm15, %v346_v51, 0.0  ;;  %v352_v53 = vsel %vm348_vm1, %v345_v50, 0.0  ;;  %v382_v0 = vadd.f32 %v378_v54, %v357_v58  ;;  %v383_v1 = vadd.f32 %v379_v55, %v358_v59 }
 0x21d   :  { %v355_v56 = vadd.f32 %v351_v52, %v250_v13  ;;  %v356_v57 = vadd.f32 %v352_v53, %v276_v18  ;;  %v35_v13 = vld [vmem:[%s1120_s1 + $0x40] sm:$0xff]  ;;  %vm1043_vm7 = vcmp.lt.s32.totalorder %v22_v35, 224  ;;  %vm700_vm13 = vcmp.ge.s32.totalorder %v965_v34, 2 }
 0x21e   :  { %vm723_vm14 = vcmp.lt.s32.totalorder %v968_v37, 14  ;;  %vm724_vm15 = vcmp.lt.s32.totalorder %v962_v33, 14  ;;  %vm725_vm1 = vcmp.lt.s32.totalorder %v965_v34, 14 }
 0x21f   :  { %v380_v62 = vadd.f32 %v376_v61, %v355_v56  ;;  %v381_v63 = vadd.f32 %v377_v60, %v356_v57 }
 0x221   :  { %v386_v2 = vpop.permute.xlu1 %385 }
 0x222   :  { %v388_v3 = vadd.f32 %v386_v2, %v380_v62  ;;  %v389_v4 = vadd.f32 %v386_v2, %v381_v63  ;;  %v390_v5 = vadd.f32 %v386_v2, %v382_v0  ;;  %v391_v6 = vadd.f32 %v386_v2, %v383_v1 }
 0x224   :  { %v392_v7 = vmax.f32 %v388_v3, 0.0  ;;  %v393_v8 = vmax.f32 %v389_v4, 0.0  ;;  %v394_v9 = vmax.f32 %v390_v5, 0.0  ;;  %v395_v10 = vmax.f32 %v391_v6, 0.0 }
 0x226   :  { %420 = vmatpush.msra.mxu0 %v392_v7  ;;  %446 = vmatpush.msra.mxu1 %v393_v8 }
 0x227   :  { %472 = vmatpush.msra.mxu2 %v394_v9  ;;  %498 = vmatpush.msra.mxu3 %v395_v10  ;;  %v36_v9 = vld [vmem:[%s1120_s1 + $0x48] sm:$0xff]  ;;  %v37_v10 = vld [vmem:[%s1120_s1 + $0x50] sm:$0xff] }
 0x228   :  { %774 = vmatmul.msk.f32.vlgmr.msra.gmra.mxu0 %vm44_vm0, %v33_v11  ;;  %780 = vmatmul.msk.f32.vlgmr.msra.gmra.mxu2 %vm44_vm0, %v33_v11 }
 0x229   :  { %783 = vmatmul.msk.f32.vlgmr.msra.gmra.mxu3 %vm44_vm0, %v33_v11  ;;  %777 = vmatmul.msk.f32.vlgmr.msra.gmra.mxu1 %vm44_vm0, %v33_v11  ;;  %v38_v11 = vld [vmem:[%s1120_s1 + $0x58] sm:$0xff]  ;;  %s826_s1 = smov 126  }
 0x230   :  { %775 = vmatmul.msk.f32.gmra.mxu0 %vm44_vm0, %v34_v12  ;;  %781 = vmatmul.msk.f32.gmra.mxu2 %vm44_vm0, %v34_v12 }
 0x231   :  { %784 = vmatmul.msk.f32.gmra.mxu3 %vm44_vm0, %v34_v12  ;;  %778 = vmatmul.msk.f32.gmra.mxu1 %vm44_vm0, %v34_v12  ;;  %v824_v12 = vmov 3  }
 0x232   :  { %813 = vset.pattern.permute.xlu2 %v824_v12  ;;  %814 = vset.pattern.permute.xlu0 %v824_v12 }
 0x238   :  { %776 = vmatmul.msk.f32.gmra.mxu0 %vm44_vm0, %v35_v13  ;;  %782 = vmatmul.msk.f32.gmra.mxu2 %vm44_vm0, %v35_v13 }
 0x239   :  { %785 = vmatmul.msk.f32.gmra.mxu3 %vm44_vm0, %v35_v13  ;;  %779 = vmatmul.msk.f32.gmra.mxu1 %vm44_vm0, %v35_v13 }
 0x2a5   :  { %v422_v15 = vpop.f32.mrf.mxu0 }
 0x2a6   :  { %v448_v17 = vpop.f32.mrf.mxu1 }
 0x2a7   :  { %511 = vrot.lane.b32.xlu0 %v448_v17, %s822_s15 }
 0x2ab   :  { %v474_v18 = vpop.f32.mrf.mxu2 }
 0x2ac   :  { %v500_v19 = vpop.f32.mrf.mxu3  ;;  %513 = vrot.lane.b32.xlu1 %v474_v18, %s822_s15 }
 0x2ad   :  { %515 = vrot.lane.b32.xlu2 %v500_v19, %s822_s15  ;;  %v425_v20 = vpop.f32.mrf.mxu0 }
 0x2ae   :  { %v451_v26 = vpop.f32.mrf.mxu1 }
 0x2b3   :  { %v477_v21 = vpop.f32.mrf.mxu2 }
 0x2b4   :  { %v503_v22 = vpop.f32.mrf.mxu3 }
 0x2b5   :  { %v428_v23 = vpop.f32.mrf.mxu0 }
 0x2b6   :  { %534 = vrot.lane.b32.xlu0 %v428_v23, %s823_s16  ;;  %v454_v39 = vpop.f32.mrf.mxu1 }
 0x2bb   :  { %v480_v27 = vpop.f32.mrf.mxu2 }
 0x2bc   :  { %v506_v29 = vpop.f32.mrf.mxu3  ;;  %538 = vrot.lane.b32.xlu2 %v480_v27, %s823_s16 }
 0x2bd   :  { %540 = vrot.lane.b32.xlu1 %v506_v29, %s823_s16 }
 0x2be   :  { %509 = vrot.lane.b32.xlu0 %v422_v15, %s822_s15 }
 0x2c4   :  { %536 = vrot.lane.b32.xlu2 %v454_v39, %s823_s16 }
 0x2c5   :  { %560 = vperm.xlu1 %812, %v883_v16  }
 0x307   :  { %v516_v40 = vpop.permute.xlu2 %515 }
 0x316   :  { %v539_v42 = vpop.permute.xlu2 %538 }
 0x319   :  { %v512_v41 = vpop.permute.xlu0 %511 }
 0x31e   :  { %v514_v43 = vpop.permute.xlu1 %513  ;;  %v537_v47 = vpop.permute.xlu2 %536 }
 0x31f   :  { %v519_v46 = vsel %vm517_vm2, %v512_v41, %v514_v43  ;;  %v544_v25 = vsel %vm542_vm4, %v537_v47, %v539_v42  ;;  %v518_v32 = vsel %vm517_vm2, %v514_v43, %v516_v40 }
 0x320   :  { %v528_v31 = vsel %vm1026_vm3, %v519_v46, 0.0  ;;  %v552_v55 = vsel %vm1035_vm6, %v544_v25, 0.0  ;;  %v533_v57 = vadd.f32 %v518_v32, %v503_v22 }
 0x321   :  { %v532_v58 = vadd.f32 %v528_v31, %v477_v21 }
 0x328   :  { %v535_v44 = vpop.permute.xlu0 %534 }
 0x329   :  { %v545_v59 = vsel %vm542_vm4, %v535_v44, %v537_v47 }
 0x32f   :  { %v541_v48 = vpop.permute.xlu1 %540 }
 0x330   :  { %v546_v50 = vsel %vm542_vm4, %v541_v48, %v535_v44  ;;  %v510_v51 = vpop.permute.xlu0 %509  ;;  %v543_v30 = vsel %vm542_vm4, %v539_v42, %v541_v48 }
 0x331   :  { %v520_v36 = vsel %vm517_vm2, %v510_v51, %v512_v41  ;;  %v521_v52 = vsel %vm517_vm2, %v516_v40, %v510_v51  ;;  %v554_v35 = vsel %vm1043_vm7, %v546_v50, 0.0  ;;  %v557_v62 = vadd.f32 %v543_v30, %v532_v58 }
 0x332   :  { %v526_v53 = vsel %vm522_vm5, %v521_v52, 0.0  ;;  %v531_v54 = vadd.f32 %v520_v36, %v451_v26  ;;  %v558_v63 = vadd.f32 %v554_v35, %v533_v57 }
 0x333   :  { %v530_v56 = vadd.f32 %v526_v53, %v425_v20 }
 0x334   :  { %v556_v60 = vadd.f32 %v552_v55, %v531_v54 }
 0x335   :  { %v555_v61 = vadd.f32 %v545_v59, %v530_v56 }
 0x337   :  { %v561_v0 = vpop.permute.xlu1 %560 }
 0x338   :  { %v563_v1 = vadd.f32 %v561_v0, %v555_v61  ;;  %v564_v2 = vadd.f32 %v561_v0, %v556_v60  ;;  %v565_v3 = vadd.f32 %v561_v0, %v557_v62  ;;  %v566_v4 = vadd.f32 %v561_v0, %v558_v63 }
 0x33a   :  { %v567_v5 = vmax.f32 %v563_v1, 0.0  ;;  %v568_v6 = vmax.f32 %v564_v2, 0.0  ;;  %v569_v7 = vmax.f32 %v565_v3, 0.0  ;;  %v570_v8 = vmax.f32 %v566_v4, 0.0 }
 0x33c   :  { %595 = vmatpush.msrb.mxu0 %v567_v5  ;;  %621 = vmatpush.msrb.mxu1 %v568_v6 }
 0x33d   :  { %647 = vmatpush.msrb.mxu2 %v569_v7  ;;  %673 = vmatpush.msrb.mxu3 %v570_v8 }
 0x33e   :  { %786 = vmatmul.msk.f32.vlgmr.msrb.gmra.mxu0 %vm44_vm0, %v36_v9  ;;  %789 = vmatmul.msk.f32.vlgmr.msrb.gmra.mxu1 %vm44_vm0, %v36_v9 }
 0x33f   :  { %792 = vmatmul.msk.f32.vlgmr.msrb.gmra.mxu2 %vm44_vm0, %v36_v9  ;;  %795 = vmatmul.msk.f32.vlgmr.msrb.gmra.mxu3 %vm44_vm0, %v36_v9 }
 0x346   :  { %787 = vmatmul.msk.f32.gmra.mxu0 %vm44_vm0, %v37_v10  ;;  %790 = vmatmul.msk.f32.gmra.mxu1 %vm44_vm0, %v37_v10 }
 0x347   :  { %793 = vmatmul.msk.f32.gmra.mxu2 %vm44_vm0, %v37_v10  ;;  %796 = vmatmul.msk.f32.gmra.mxu3 %vm44_vm0, %v37_v10 }
 0x34e   :  { %788 = vmatmul.msk.f32.gmra.mxu0 %vm44_vm0, %v38_v11  ;;  %791 = vmatmul.msk.f32.gmra.mxu1 %vm44_vm0, %v38_v11 }
 0x34f   :  { %794 = vmatmul.msk.f32.gmra.mxu2 %vm44_vm0, %v38_v11  ;;  %797 = vmatmul.msk.f32.gmra.mxu3 %vm44_vm0, %v38_v11  ;;  %vm692_vm0 = vcmp.lt.s32.totalorder %v886_v24, 2 }
 0x3bb   :  { %v597_v13 = vpop.f32.mrf.mxu0  ;;  %v623_v14 = vpop.f32.mrf.mxu1 }
 0x3bc   :  { %684 = vrot.lane.b32.xlu0 %v597_v13, %s825_s23  ;;  %686 = vrot.lane.b32.xlu1 %v623_v14, %s825_s23 }
 0x3c2   :  { %v649_v15 = vpop.f32.mrf.mxu2  ;;  %v675_v17 = vpop.f32.mrf.mxu3 }
 0x3c3   :  { %v600_v18 = vpop.f32.mrf.mxu0  ;;  %688 = vrot.lane.b32.xlu2 %v649_v15, %s825_s23  ;;  %v626_v19 = vpop.f32.mrf.mxu1 }
 0x3c4   :  { %690 = vrot.lane.b32.xlu0 %v675_v17, %s825_s23 }
 0x3ca   :  { %v652_v20 = vpop.f32.mrf.mxu2  ;;  %v678_v21 = vpop.f32.mrf.mxu3 }
 0x3cb   :  { %v603_v22 = vpop.f32.mrf.mxu0  ;;  %v629_v23 = vpop.f32.mrf.mxu1 }
 0x3cc   :  { %709 = vrot.lane.b32.xlu1 %v603_v22, %s826_s1  ;;  %711 = vrot.lane.b32.xlu2 %v629_v23, %s826_s1 }
 0x3d2   :  { %v655_v26 = vpop.f32.mrf.mxu2  ;;  %v681_v27 = vpop.f32.mrf.mxu3 }
 0x3d3   :  { %713 = vrot.lane.b32.xlu0 %v655_v26, %s826_s1 }
 0x3d4   :  { %715 = vrot.lane.b32.xlu1 %v681_v27, %s826_s1  ;;  %735 = vperm.xlu2 %813, %v883_v16  }
 0x41d   :  { %v689_v29 = vpop.permute.xlu2 %688 }
 0x426   :  { %v712_v40 = vpop.permute.xlu2 %711 }
 0x42e   :  { %v685_v39 = vpop.permute.xlu0 %684  ;;  %v687_v41 = vpop.permute.xlu1 %686 }
 0x42f   :  { %v695_v47 = vsel %vm692_vm0, %v685_v39, %v687_v41  ;;  %v694_v48 = vsel %vm692_vm0, %v687_v41, %v689_v29  ;;  %v736_v25 = vpop.permute.xlu2 %735 }
 0x430   :  { %v702_v50 = vsel %vm698_vm11, %v695_v47, 0.0  ;;  %v703_v51 = vsel %vm699_vm12, %v694_v48, 0.0 }
 0x431   :  { %v706_v52 = vadd.f32 %v702_v50, %v626_v19  ;;  %v707_v53 = vadd.f32 %v703_v51, %v652_v20 }
 0x436   :  { %v691_v42 = vpop.permute.xlu0 %690 }
 0x437   :  { %v696_v43 = vsel %vm692_vm0, %v691_v42, %v685_v39  ;;  %v693_v38 = vsel %vm692_vm0, %v689_v29, %v691_v42 }
 0x438   :  { %v701_v44 = vsel %vm697_vm8, %v696_v43, 0.0  ;;  %v704_v31 = vsel %vm700_vm13, %v693_v38, 0.0 }
 0x439   :  { %v705_v16 = vadd.f32 %v701_v44, %v600_v18  ;;  %v708_v30 = vadd.f32 %v704_v31, %v678_v21 }
 0x43e   :  { %v710_v45 = vpop.permute.xlu1 %709 }
 0x43f   :  { %v720_v46 = vsel %vm717_vm9, %v710_v45, %v712_v40 }
 0x440   :  { %v726_v49 = vsel %vm722_vm10, %v720_v46, 0.0 }
 0x441   :  { %v730_v28 = vadd.f32 %v726_v49, %v705_v16 }
 0x443   :  { %v738_v32 = vadd.f32 %v736_v25, %v730_v28 }
 0x445   :  { %742 = vst [vmem:[%s1122_s3] sm:$0xff] %v738_v32  ;;  %v714_v36 = vpop.permute.xlu0 %713 }
 0x446   :  { %v719_v54 = vsel %vm717_vm9, %v712_v40, %v714_v36  ;;  %v716_v55 = vpop.permute.xlu1 %715 }
 0x447   :  { %v727_v35 = vsel %vm723_vm14, %v719_v54, 0.0  ;;  %v718_v37 = vsel %vm717_vm9, %v714_v36, %v716_v55  ;;  %v721_v56 = vsel %vm717_vm9, %v716_v55, %v710_v45 }
 0x448   :  { %v731_v57 = vadd.f32 %v727_v35, %v706_v52  ;;  %v728_v58 = vsel %vm724_vm15, %v718_v37, 0.0  ;;  %v729_v59 = vsel %vm725_vm1, %v721_v56, 0.0 }
 0x449   :  { %v732_v33 = vadd.f32 %v728_v58, %v707_v53  ;;  %v733_v60 = vadd.f32 %v729_v59, %v708_v30 }
 0x44a   :  { %v739_v34 = vadd.f32 %v736_v25, %v731_v57 }
 0x44b   :  { %v740_v61 = vadd.f32 %v736_v25, %v732_v33  ;;  %v741_v62 = vadd.f32 %v736_v25, %v733_v60 }
 0x44c   :  { %743 = vst [vmem:[%s1122_s3 + $0x8] sm:$0xff] %v739_v34 }
 0x44d   :  { %744 = vst [vmem:[%s1122_s3 + $0x10] sm:$0xff] %v740_v61 }
 0x44e   :  { %745 = vst [vmem:[%s1122_s3 + $0x18] sm:$0xff] %v741_v62 }

</bundles_post_ra>
